<compile_context>
chip_gen: v7x
topology: tpu7x:2x2x1
jax: 0.10.0
libtpu: 0.0.40
codegen_flags: <defaults>
</compile_context>

<pallas_src>
import jax
import jax.numpy as jnp
from jax.experimental import pallas as pl
from jax.experimental.pallas import tpu as pltpu

SHOTS = 1000.0


def net_kernel(p_ref, out_ref):
    p = p_ref[...]                                             # (1, 32) f32

    # --- QuantumLayer surrogate: deterministic expected counts -------------
    # counts tiled twice along lanes -> [c0,c1,c2,c3,c0,c1,c2,c3] so the fc1
    # multiply against both packed w1 columns happens in one VPU op.
    idx = jax.lax.broadcasted_iota(jnp.int32, (1, 8), 1) & 3   # 0..3,0..3
    c = jnp.cos(p[:, 0:8])                                     # single EUP op
    c2 = c * c                                                 # P(|0>)
    s2 = 1.0 - c2                                              # P(|1>)
    # qiskit little-endian bitstrings: lane i -> q0 bit = i&1, q1 bit = i>>1.
    # (Both qubits share theta, so the ordering is numerically irrelevant.)
    p_q0 = jnp.where((idx & 1) == 1, s2, c2)
    p_q1 = jnp.where((idx >> 1) == 1, s2, c2)
    counts8 = SHOTS * p_q0 * p_q1                              # (1, 8)

    # --- fc1 + relu (VPU multiply + sub-vreg lane sums, no MXU) -------------
    prod1 = counts8 * p[:, 8:16]                               # counts * [w1 col0 | col1]
    h0 = jnp.maximum(
        jnp.sum(prod1[:, 0:4], axis=1, keepdims=True) + p[:, 16:17], 0.0)  # (1,1)
    h1 = jnp.maximum(
        jnp.sum(prod1[:, 4:8], axis=1, keepdims=True) + p[:, 17:18], 0.0)  # (1,1)

    # --- fc2: lane-broadcast multiplies, no concatenates --------------------
    out_ref[...] = h0 * p[:, 18:20] + h1 * p[:, 20:22] + p[:, 22:24]       # (1,2)


def prepare_net_params(theta, params):
    """Pack theta + all fc weights/biases into one (1,32) f32 slab.

    Call ONCE at parameter-prep time (kept out of the per-forward path).
    `params` = (w1, b1, w2, b2) with w1:(4,2)=fc1.weight.T, w2:(2,2)=fc2.weight.T.
    """
    w1, b1, w2, b2 = params
    half = jnp.full((8,), jnp.float32(theta) * 0.5, jnp.float32)
    return jnp.concatenate([
        half,
        w1[:, 0].astype(jnp.float32), w1[:, 1].astype(jnp.float32),
        b1.astype(jnp.float32),
        w2[0, :].astype(jnp.float32), w2[1, :].astype(jnp.float32),
        b2.astype(jnp.float32),
        jnp.zeros((8,), jnp.float32),
    ]).reshape(1, 32)


_COST = pl.CostEstimate(flops=80, transcendentals=8, bytes_accessed=(32 + 2) * 4)


@jax.jit
def net_forward(x, packed_params):
    """Pallas implementation of Net.forward. `x` is ignored (as in the torch model)."""
    del x  # QuantumLayer.forward discards its input.
    out = pl.pallas_call(
        net_kernel,
        out_shape=jax.ShapeDtypeStruct((1, 2), jnp.float32),
        in_specs=[pl.BlockSpec(memory_space=pltpu.MemorySpace.VMEM)],   # (1,32) slab
        out_specs=pl.BlockSpec(memory_space=pltpu.MemorySpace.VMEM),
        cost_estimate=_COST,
    )(packed_params)
    return out.reshape(2)


def _reference(theta, params):
    """Pure-JAX reference of the same surrogate math (sanity check)."""
    w1, b1, w2, b2 = params
    half = jnp.float32(theta) * 0.5
    c2 = jnp.cos(half) ** 2
    s2 = 1.0 - c2
    # little-endian: counts['01'] = P(q0=1)P(q1=0) = s2*c2 (equal to c2*s2 here)
    counts = SHOTS * jnp.array(
        [c2 * c2, s2 * c2, c2 * s2, s2 * s2], dtype=jnp.float32)
    h = jnp.maximum(counts @ w1 + b1, 0.0)
    return h @ w2 + b2


if __name__ == "__main__":
    key = jax.random.PRNGKey(0)
    k_x, k_w1, k_b1, k_w2, k_b2 = jax.random.split(key, 5)

    # Input (unused by the forward pass, kept for interface parity).
    x = jax.random.normal(k_x, (4,), jnp.float32)
    theta = 0.7

    # Deterministic init mimicking torch.nn.Linear's U(-1/sqrt(fan_in), +).
    bound1 = 1.0 / (4.0 ** 0.5)
    w1 = jax.random.uniform(k_w1, (4, 2), jnp.float32, -bound1, bound1)  # fc1.weight.T
    b1 = jax.random.uniform(k_b1, (2,), jnp.float32, -bound1, bound1)
    bound2 = 1.0 / (2.0 ** 0.5)
    w2 = jax.random.uniform(k_w2, (2, 2), jnp.float32, -bound2, bound2)  # fc2.weight.T
    b2 = jax.random.uniform(k_b2, (2,), jnp.float32, -bound2, bound2)
    params = (w1, b1, w2, b2)

    # Pack once, outside the per-call path.
    packed = prepare_net_params(theta, params)

    out = net_forward(x, packed)
    jax.block_until_ready(out)

    ref = _reference(theta, params)
    assert out.shape == (2,)
    assert jnp.allclose(out, ref, atol=5e-3, rtol=1e-3), (out, ref)

    print("KERNEL_OK")
</pallas_src>

<mosaic_0001>
module attributes {stable_mosaic.version = 11 : i64} {
  func.func @net_kernel(%arg0: memref<1x32xf32, #tpu.memory_space<vmem>>, %arg1: memref<1x2xf32, #tpu.memory_space<vmem>>) attributes {dimension_semantics = [], scalar_prefetch = 0 : i64, scratch_operands = 0 : i64, tpu.core_type = #tpu.core_type<tc>} {
    %c0 = arith.constant 0 : index
    %c0_0 = arith.constant 0 : index
    %0 = vector.load %arg0[%c0, %c0_0] : memref<1x32xf32, #tpu.memory_space<vmem>>, vector<1x32xf32>
    %1 = tpu.iota {dimensions = array<i32: 1>} : vector<1x8xi32>
    %c3_i32 = arith.constant 3 : i32
    %2 = vector.broadcast %c3_i32 : i32 to vector<1x8xi32>
    %3 = arith.andi %1, %2 : vector<1x8xi32>
    %4 = vector.extract_strided_slice %0 {offsets = [0, 0], sizes = [1, 8], strides = [1, 1]} : vector<1x32xf32> to vector<1x8xf32>
    %5 = math.cos %4 : vector<1x8xf32>
    %6 = arith.mulf %5, %5 : vector<1x8xf32>
    %cst = arith.constant 1.000000e+00 : f32
    %7 = vector.broadcast %cst : f32 to vector<1x8xf32>
    %8 = arith.subf %7, %6 : vector<1x8xf32>
    %c1_i32 = arith.constant 1 : i32
    %9 = vector.broadcast %c1_i32 : i32 to vector<1x8xi32>
    %10 = arith.andi %3, %9 : vector<1x8xi32>
    %c1_i32_1 = arith.constant 1 : i32
    %11 = vector.broadcast %c1_i32_1 : i32 to vector<1x8xi32>
    %12 = arith.cmpi eq, %10, %11 : vector<1x8xi32>
    %13 = arith.select %12, %8, %6 : vector<1x8xi1>, vector<1x8xf32>
    %c1_i32_2 = arith.constant 1 : i32
    %14 = vector.broadcast %c1_i32_2 : i32 to vector<1x8xi32>
    %15 = arith.shrsi %3, %14 : vector<1x8xi32>
    %c1_i32_3 = arith.constant 1 : i32
    %16 = vector.broadcast %c1_i32_3 : i32 to vector<1x8xi32>
    %17 = arith.cmpi eq, %15, %16 : vector<1x8xi32>
    %18 = arith.select %17, %8, %6 : vector<1x8xi1>, vector<1x8xf32>
    %cst_4 = arith.constant 1.000000e+03 : f32
    %19 = vector.broadcast %cst_4 : f32 to vector<1x8xf32>
    %20 = arith.mulf %19, %13 : vector<1x8xf32>
    %21 = arith.mulf %20, %18 : vector<1x8xf32>
    %22 = vector.extract_strided_slice %0 {offsets = [0, 8], sizes = [1, 8], strides = [1, 1]} : vector<1x32xf32> to vector<1x8xf32>
    %23 = arith.mulf %21, %22 : vector<1x8xf32>
    %24 = vector.extract_strided_slice %23 {offsets = [0, 0], sizes = [1, 4], strides = [1, 1]} : vector<1x8xf32> to vector<1x4xf32>
    %cst_5 = arith.constant dense<0.000000e+00> : vector<1xf32>
    %25 = vector.multi_reduction <add>, %24, %cst_5 [1] : vector<1x4xf32> to vector<1xf32>
    %26 = vector.shape_cast %25 : vector<1xf32> to vector<1x1xf32>
    %27 = vector.extract_strided_slice %0 {offsets = [0, 16], sizes = [1, 1], strides = [1, 1]} : vector<1x32xf32> to vector<1x1xf32>
    %28 = arith.addf %26, %27 : vector<1x1xf32>
    %cst_6 = arith.constant 0.000000e+00 : f32
    %29 = vector.broadcast %cst_6 : f32 to vector<1x1xf32>
    %30 = arith.maximumf %28, %29 : vector<1x1xf32>
    %31 = vector.extract_strided_slice %23 {offsets = [0, 4], sizes = [1, 4], strides = [1, 1]} : vector<1x8xf32> to vector<1x4xf32>
    %cst_7 = arith.constant dense<0.000000e+00> : vector<1xf32>
    %32 = vector.multi_reduction <add>, %31, %cst_7 [1] : vector<1x4xf32> to vector<1xf32>
    %33 = vector.shape_cast %32 : vector<1xf32> to vector<1x1xf32>
    %34 = vector.extract_strided_slice %0 {offsets = [0, 17], sizes = [1, 1], strides = [1, 1]} : vector<1x32xf32> to vector<1x1xf32>
    %35 = arith.addf %33, %34 : vector<1x1xf32>
    %cst_8 = arith.constant 0.000000e+00 : f32
    %36 = vector.broadcast %cst_8 : f32 to vector<1x1xf32>
    %37 = arith.maximumf %35, %36 : vector<1x1xf32>
    %38 = vector.extract_strided_slice %0 {offsets = [0, 18], sizes = [1, 2], strides = [1, 1]} : vector<1x32xf32> to vector<1x2xf32>
    %39 = vector.broadcast %30 : vector<1x1xf32> to vector<1x2xf32>
    %40 = arith.mulf %39, %38 : vector<1x2xf32>
    %41 = vector.extract_strided_slice %0 {offsets = [0, 20], sizes = [1, 2], strides = [1, 1]} : vector<1x32xf32> to vector<1x2xf32>
    %42 = vector.broadcast %37 : vector<1x1xf32> to vector<1x2xf32>
    %43 = arith.mulf %42, %41 : vector<1x2xf32>
    %44 = arith.addf %40, %43 : vector<1x2xf32>
    %45 = vector.extract_strided_slice %0 {offsets = [0, 22], sizes = [1, 2], strides = [1, 1]} : vector<1x32xf32> to vector<1x2xf32>
    %46 = arith.addf %44, %45 : vector<1x2xf32>
    %c0_9 = arith.constant 0 : index
    %c0_10 = arith.constant 0 : index
    %47 = vector.load %arg1[%c0_9, %c0_10] : memref<1x2xf32, #tpu.memory_space<vmem>>, vector<1x2xf32>
    tpu.vector_store %arg1[%c0_9, %c0_10], %46 {strides = array<i32>} : memref<1x2xf32, #tpu.memory_space<vmem>>, vector<1x2xf32>,
    return
  }
}

</mosaic_0001>

<bundles_post_ra>
// kernel: net_forward.1
= control target key start
LH: loop header
LB: loop body
LE: loop exit
PB: predicated region body
PF: predicated region fallthrough
CT: control target
= control target key end

     0   :  { %6 = vsyncpa [#allocation3], 0  ;;  %s367_s0 = inlined_call_operand.hbm [shape: f32[1,32], index: 0, kind: input, shape index: {}]   ;;  %s368_s1 = inlined_call_operand.hbm [shape: f32[1,2], index: 1, kind: output, shape index: {}]  }
   0x1   :  { %7 = vsyncpa [#allocation4], 0  ;;  %s285_s6 = smov [#allocation2]   ;;  %s237_s10 = scalar_lea.hbm %s367_s0, 16 }
   0x2   :  { %s14_s7 = sshll.u32 %s285_s6, 4  ;;  %p238_p0 = scmp.ne.s32.totalorder %s367_s0, %s237_s10  ;;  %s15_s7 = int_to_ptr.vmem [resolvable:$true] %s14_s7 }
   0x3   :  { %p241_p1 = scmp.lt.u32.totalorder %s237_s10, %s367_s0 }
   0x5   :  { %p243_p2 = pnand %p241_p1, %p238_p0 }
   0x7   :  { %246 = shalt.err (!%p243_p2)
}
   0x8   :  { %s247_s15 = scalar_lea.vmem %s15_s7, 16  ;;  %s251_s16 = scalar_lea.vmem %s15_s7, 32 }
   0x9   :  { %p248_p3 = scmp.ne.s32.totalorder %s15_s7, %s247_s15  ;;  %p252_p4 = scmp.lt.s32.totalorder %s15_s7, %s15_s7 }
   0xa   :  { %p253_p5 = scmp.lt.s32.totalorder %s251_s16, %s247_s15 }
   0xc   :  { %p254_p6 = por %p253_p5, %p252_p4 }
   0xe   :  { %p255_p7 = pnand %p254_p6, %p248_p3 }
  0x10   :  { %258 = shalt.err (!%p255_p7)
}
  0x11   :  { %17 = dma.hbm_to_vmem [thread:$0]  %s367_s0, 16, %s15_s7, [#allocation3]  }
  0x12   :  { %281 = dma.done.wait [#allocation3], 16  }
  0x13   :  { %282 = vsyncadd [#allocation3], 4294967280  ;;  %v22_v0 = vlaneseq  ;;  %v324_v3 = vld [vmem:[#allocation2] sm:$0x1]  ;;  %s286_s19 = smov 120   ;;  %vm147_vm15 = vcmask 24576  }
  0x14   :  { %v28_v4 = vand.u32 2139095040, %v324_v3  ;;  %v25_v7 = vand.u32 2147483647, %v324_v3  ;;  %v287_v16 = vmov 683565275   ;;  %vm27_vm7 = vcmp.lt.s32.totalorder %v324_v3, 0 }
  0x15   :  { %v140_v1 = vshrl.u32 %v22_v0, 7  ;;  %v288_v18 = vmov 2475754826   ;;  %v289_v20 = vmov 2131351028   ;;  %vm117_vm12 = vweird.f32 %v324_v3  ;;  %s293_s0 = smov 124  }
  0x16   :  { %v29_v6 = vshrl.u32 %v28_v4, 23  ;;  %v32_v10 = vand.u32 8388607, %v25_v7  ;;  %v290_v22 = vmov 2102212464   ;;  %s294_s20 = smov 112  }
  0x17   :  { %v141_v2 = vsub.s32 0, %v140_v1  ;;  %v291_v24 = vmov 920167782   ;;  %v292_v31 = vmov 1326507024   ;;  %s296_s21 = smov 111  }
  0x18   :  { %v208_v8 = vadd.s32 4294967169, %v29_v6  ;;  %v33_v14 = vor.u32 8388608, %v32_v10  ;;  %vm26_vm8 = vcmp.le.f32.partialorder %v25_v7, 0.7853982  ;;  %s297_s22 = smov 108   ;;  %s298_s23 = smov 110  }
  0x19   :  { %v328_v5 = vrot.slane %v324_v3, %v141_v2  ;;  %s299_s24 = smov 106   ;;  %s300_s25 = smov [#allocation5]  }
  0x1a   :  { %v35_v9 = vadd.s32 1, %v208_v8  ;;  %v73_v33 = vshll.u32 %v33_v14, 8  ;;  %s199_s26 = sshll.u32 %s300_s25, 4  ;;  %s200_s26 = int_to_ptr.vmem [resolvable:$true] %s199_s26 }
  0x1b   :  { %143 = vrot.lane.b32.xlu0 %v328_v5, %s286_s19  ;;  %s259_s27 = scalar_lea.vmem %s200_s26, 16  ;;  %s263_s28 = scalar_lea.vmem %s200_s26, 32 }
  0x1c   :  { %vm36_vm0 = vcmp.gt.s32.totalorder %v35_v9, 0  ;;  %p260_p8 = scmp.ne.s32.totalorder %s200_s26, %s259_s27  ;;  %p264_p9 = scmp.lt.s32.totalorder %s200_s26, %s200_s26 }
  0x1d   :  { %v37_v11 = vsel %vm36_vm0, %v35_v9, 0  ;;  %vm191_vm0 = vcmask 8192   ;;  %p265_p10 = scmp.lt.s32.totalorder %s263_s28, %s259_s27 }
  0x1e   :  { %v39_v12 = vand.u32 31, %v37_v11  ;;  %v38_v13 = vshrl.u32 %v37_v11, 5 }
  0x1f   :  { %p266_p11 = por %p265_p10, %p264_p9 }
  0x20   :  { %v40_v15 = vsub.s32 32, %v39_v12  ;;  %v42_v17 = vshll.u32 %v287_v16, %v39_v12  ;;  %v45_v19 = vshll.u32 %v288_v18, %v39_v12  ;;  %v48_v21 = vshll.u32 %v289_v20, %v39_v12 }
  0x21   :  { %v51_v23 = vshll.u32 %v290_v22, %v39_v12  ;;  %v54_v25 = vshll.u32 %v291_v24, %v39_v12  ;;  %vm57_vm1 = vcmp.lt.s32.totalorder %v38_v13, 1  ;;  %vm60_vm2 = vcmp.lt.s32.totalorder %v38_v13, 4  ;;  %p267_p12 = pnand %p266_p11, %p260_p8 }
  0x22   :  { %v41_v26 = vshrl.u32 %v287_v16, %v40_v15  ;;  %v43_v27 = vshrl.u32 %v288_v18, %v40_v15  ;;  %v46_v28 = vshrl.u32 %v289_v20, %v40_v15  ;;  %v49_v29 = vshrl.u32 %v290_v22, %v40_v15 }
  0x23   :  { %v52_v30 = vshrl.u32 %v291_v24, %v40_v15  ;;  %v55_v32 = vshrl.u32 %v292_v31, %v40_v15  ;;  %vm58_vm3 = vcmp.lt.s32.totalorder %v38_v13, 2  ;;  %vm59_vm4 = vcmp.lt.s32.totalorder %v38_v13, 3 }
  0x24   :  { %v44_v34 = vor.u32 %v43_v27, %v42_v17  ;;  %v47_v35 = vor.u32 %v46_v28, %v45_v19  ;;  %v50_v36 = vor.u32 %v49_v29, %v48_v21 }
  0x25   :  { %v53_v37 = vor.u32 %v52_v30, %v51_v23  ;;  %v56_v38 = vor.u32 %v55_v32, %v54_v25 }
  0x26   :  { %v61_v39 = vsel %vm57_vm1, %v41_v26, %v44_v34  ;;  %v62_v40 = vsel %vm60_vm2, %v50_v36, 2102212464  ;;  %v65_v41 = vsel %vm57_vm1, %v44_v34, %v47_v35  ;;  %v69_v42 = vsel %vm57_vm1, %v47_v35, %v50_v36 }
  0x27   :  { %v63_v43 = vsel %vm59_vm4, %v47_v35, %v62_v40  ;;  %v66_v44 = vsel %vm60_vm2, %v53_v37, 920167782  ;;  %v70_v45 = vsel %vm60_vm2, %v56_v38, 1326507024  ;;  %v23_v26 = vand.u32 127, %v22_v0 }
  0x28   :  { %v67_v46 = vsel %vm59_vm4, %v50_v36, %v66_v44  ;;  %v71_v47 = vsel %vm59_vm4, %v53_v37, %v70_v45  ;;  %v64_v48 = vsel %vm58_vm3, %v61_v39, %v63_v43  ;;  %v295_v45 = vmov 0  }
  0x29   :  { %v68_v49 = vsel %vm58_vm3, %v65_v41, %v67_v46  ;;  %v72_v50 = vsel %vm58_vm3, %v69_v42, %v71_v47  ;;  %v80_v55 = vmul.u32 %v73_v33, %v64_v48  ;;  %v24_v29 = vand.u32 3, %v23_v26  ;;  %232 = vset.pattern.permute.xlu0 %v295_v45 }
  0x2a   :  { %v334_v51 = vmul.u32.u64.low %v73_v33, %v72_v50  ;;  %v335_v52 = vmul.u32.u64.high %v73_v33, %v72_v50, %v334_v51  ;;  %v337_v53 = vmul.u32.u64.low %v73_v33, %v68_v49  ;;  %v338_v54 = vmul.u32.u64.high %v73_v33, %v68_v49, %v337_v53 }
  0x2b   :  { %v130_v33 = vand.u32 1, %v24_v29  ;;  %v133_v34 = vshra.s32 %v24_v29, 1 }
  0x2c   :  { %vm82_vm5 = vc.u32 %v335_v52, %v337_v53  ;;  %v83_v56 = vadd.s32 1, %v338_v54  ;;  %v81_v6 = vadd.s32 %v337_v53, %v335_v52 }
  0x2d   :  { %vm131_vm13 = vcmp.eq.s32.totalorder %v130_v33, 1  ;;  %vm134_vm14 = vcmp.eq.s32.totalorder %v133_v34, 1 }
  0x2e   :  { %v84_v57 = vsel %vm82_vm5, %v83_v56, %v338_v54 }
  0x2f   :  { %v85_v58 = vadd.s32 %v84_v57, %v80_v55 }
  0x31   :  { %v86_v59 = vadd.s32 536870912, %v85_v58 }
  0x33   :  { %v87_v60 = vshrl.u32 %v86_v59, 30 }
  0x35   :  { %v88_v61 = vshll.u32 %v87_v60, 30  ;;  %v111_v21 = vsub.s32 4, %v87_v60 }
  0x37   :  { %v89_v62 = vsub.s32 %v85_v58, %v88_v61  ;;  %v112_v24 = vsel %vm27_vm7, %v111_v21, %v87_v60 }
  0x38   :  { %v114_v25 = vsel %vm26_vm8, 0, %v112_v24 }
  0x39   :  { %v91_v63 = vsub.s32 0, %v89_v62  ;;  %v118_v27 = vand.u32 3, %v114_v25 }
  0x3b   :  { %v209_v1 = vmin.u32 %v91_v63, %v89_v62  ;;  %vm123_vm9 = vcmp.eq.s32.totalorder %v118_v27, 2  ;;  %vm120_vm10 = vcmp.eq.s32.totalorder %v118_v27, 0  ;;  %vm119_vm11 = vcmp.lt.s32.totalorder %v118_v27, 2 }
  0x3d   :  { %v93_v2 = vclz %v209_v1 }
  0x3f   :  { %v210_v4 = vadd.s32 4294967294, %v93_v2 }
  0x41   :  { %vm211_vm6 = vcmp.lt.s32.totalorder %v210_v4, 0 }
  0x42   :  { %v96_v8 = vsel %vm211_vm6, 0, %v210_v4 }
  0x43   :  { %v97_v9 = vsub.s32 32, %v96_v8  ;;  %v98_v10 = vshll.u32 %v89_v62, %v96_v8  ;;  %v101_v11 = vsub.s32 4294967266, %v96_v8 }
  0x45   :  { %v99_v12 = vshrl.u32 %v81_v6, %v97_v9  ;;  %v102_v13 = vadd.s32 127, %v101_v11 }
  0x47   :  { %v100_v14 = vor.u32 %v99_v12, %v98_v10  ;;  %v103_v15 = vshll.u32 %v102_v13, 23 }
  0x49   :  { %v104_v16 = vor.u32 4788187, %v103_v15  ;;  %v107_v17 = vcvt.s32.f32 %v100_v14 }
  0x4b   :  { %v105_v18 = vand.u32 2147483647, %v104_v16 }
  0x4d   :  { %v108_v19 = vmul.f32 %v107_v17, %v105_v18 }
  0x4f   :  { %v109_v20 = vxor.u32 2147483648, %v108_v19 }
  0x51   :  { %v110_v22 = vsel %vm27_vm7, %v109_v20, %v108_v19 }
  0x52   :  { %v113_v23 = vsel %vm26_vm8, %v324_v3, %v110_v22 }
  0x53   :  { %233 = vcosq.f32 %v113_v23 }
  0x54   :  { %235 = vsinq.f32 %v113_v23 }
  0x5d   :  { %v234_v28 = vpop.eup %233 }
  0x5e   :  { %v236_v30 = vpop.eup %235  ;;  %v124_v31 = vxor.u32 2147483648, %v234_v28 }
  0x5f   :  { %v121_v7 = vxor.u32 2147483648, %v236_v30 }
  0x60   :  { %v125_v32 = vsel %vm123_vm9, %v124_v31, %v236_v30 }
  0x61   :  { %v122_v35 = vsel %vm120_vm10, %v234_v28, %v121_v7 }
  0x62   :  { %v126_v36 = vsel %vm119_vm11, %v122_v35, %v125_v32 }
  0x63   :  { %v127_v37 = vsel %vm117_vm12, nan, %v126_v36 }
  0x64   :  { %v128_v38 = vmul.f32 %v127_v37, %v127_v37 }
  0x66   :  { %v129_v0 = vsub.f32 1.0, %v128_v38 }
  0x68   :  { %v132_v39 = vsel %vm131_vm13, %v129_v0, %v128_v38  ;;  %v135_v40 = vsel %vm134_vm14, %v129_v0, %v128_v38 }
  0x69   :  { %v136_v41 = vmul.f32 1000.0, %v132_v39 }
  0x6b   :  { %v137_v42 = vmul.f32 %v136_v41, %v135_v40 }
  0x8d   :  { %v144_v43 = vpop.permute.xlu0 %143 }
  0x8e   :  { %v146_v44 = vmul.f32 %v144_v43, %v137_v42 }
  0x90   :  { %157 = vrot.lane.b32.xlu0 %v146_v44, %s293_s0  ;;  %v148_v3 = vsel %vm147_vm15, %v146_v44, 0.0 }
  0x91   :  { %149 = vadd.xlane.f32.xlu1 %v148_v3 }
  0x94   :  { %151 = vrot.lane.b32.xlu0 %v328_v5, %s294_s20 }
 0x102   :  { %v158_v46 = vpop.permute.xlu0 %157 }
 0x103   :  { %v160_v47 = vsel %vm147_vm15, %v158_v46, 0.0 }
 0x104   :  { %161 = vadd.xlane.f32.xlu1 %v160_v47 }
 0x106   :  { %v152_v48 = vpop.permute.xlu0 %151 }
 0x115   :  { %163 = vrot.lane.b32.xlu1 %v328_v5, %s296_s21 }
 0x119   :  { %182 = vrot.lane.b32.xlu1 %v328_v5, %s297_s22 }
 0x11e   :  { %v150_v49 = vpop.xlane.xlu1 %149 }
 0x11f   :  { %v154_v50 = vadd.f32 %v152_v48, %v150_v49 }
 0x121   :  { %v155_v51 = vmax.f32 %v154_v50, 0.0 }
 0x123   :  { %170 = vperm.xlu0 %232, %v155_v51  }
 0x191   :  { %v162_v52 = vpop.xlane.xlu1 %161 }
 0x195   :  { %v164_v53 = vpop.permute.xlu1 %163 }
 0x196   :  { %v166_v54 = vadd.f32 %v164_v53, %v162_v52 }
 0x198   :  { %v167_v55 = vmax.f32 %v166_v54, 0.0 }
 0x199   :  { %v183_v58 = vpop.permute.xlu1 %182 }
 0x19a   :  { %179 = vperm.xlu0 %232, %v167_v55  }
 0x19e   :  { %173 = vrot.lane.b32.xlu0 %v328_v5, %s298_s23 }
 0x1a2   :  { %187 = vrot.lane.b32.xlu0 %v328_v5, %s299_s24  ;;  %v171_v56 = vpop.permute.xlu0 %170 }
 0x219   :  { %v180_v57 = vpop.permute.xlu0 %179 }
 0x21a   :  { %v185_v60 = vmul.f32 %v183_v58, %v180_v57 }
 0x21d   :  { %v174_v59 = vpop.permute.xlu0 %173 }
 0x21e   :  { %v176_v61 = vmul.f32 %v174_v59, %v171_v56 }
 0x220   :  { %v186_v62 = vadd.f32 %v185_v60, %v176_v61 }
 0x221   :  { %v188_v63 = vpop.permute.xlu0 %187 }
 0x222   :  { %v190_v1 = vadd.f32 %v188_v63, %v186_v62 }
 0x224   :  { %192 = vst.msk [vmem:[#allocation5] sm:$0x1] %vm191_vm0, %v190_v1 }
 0x225   :  { %270 = shalt.err (!%p267_p12)
}
 0x226   :  { %s271_s2 = scalar_lea.hbm %s368_s1, 16 }
 0x227   :  { %p272_p13 = scmp.ne.s32.totalorder %s368_s1, %s271_s2  ;;  %p275_p0 = scmp.lt.u32.totalorder %s271_s2, %s368_s1 }
 0x229   :  { %p277_p1 = pnand %p275_p0, %p272_p13 }
 0x22b   :  { %280 = shalt.err (!%p277_p1)
}
 0x22c   :  { %202 = dma.vmem_to_hbm [thread:$0]  %s200_s26, 16, %s368_s1, [#allocation4]  }
 0x22d   :  { %283 = dma.done.wait [#allocation4], 16  }
 0x22e   :  { %284 = vsyncadd [#allocation4], 4294967280 }
 0x22f   :  { %206 = vsyncpa [#allocation3], 1 }
 0x230   :  { %207 = vsyncpa [#allocation4], 1 }

</bundles_post_ra>
